<compile_context>
chip_gen: v6e
topology: v6e:2x2x1
jax: 0.10.0
libtpu: 0.0.40
codegen_flags: <defaults>
</compile_context>

<pallas_src>
import jax
import jax.numpy as jnp
from jax.experimental import pallas as pl
from jax.experimental.pallas import tpu as pltpu


def _complex_multiply_pool_kernel(amp_ref, phase_ref, real_ref, imag_ref):
    # Inputs are already the seq-0 slab, shape (tile_b, H): dense loads.
    amp = amp_ref[...].astype(jnp.float32)
    ph = phase_ref[...].astype(jnp.float32)
    cos_p = jnp.cos(ph)   # EUP
    sin_p = jnp.sin(ph)   # EUP
    real_ref[...] = (amp * cos_p).astype(real_ref.dtype)
    imag_ref[...] = (amp * sin_p).astype(imag_ref.dtype)


def complex_multiply_pool(amplitude, phase, *, row_tile=1024):
    """amplitude, phase: (B, S, H) -> (real (B, H), imag (B, H))."""
    assert amplitude.shape == phase.shape
    B, S, H = amplitude.shape
    out_dtype = jnp.result_type(amplitude.dtype, phase.dtype)

    # Slice in the wrapper: only seq index 0 ever reaches the kernel, so we
    # never DMA the other S-1 slabs from HBM.
    amp0 = jax.lax.slice_in_dim(amplitude, 0, 1, axis=1).reshape(B, H)
    ph0 = jax.lax.slice_in_dim(phase, 0, 1, axis=1).reshape(B, H)

    # Whole-array block for small B; otherwise tile rows (multiple of 8 so the
    # (8,128) block constraint holds; 1024 rows x H keeps double-buffered VMEM
    # well under the v7x scoped default while staying near the HBM roofline).
    if B <= row_tile:
        tb = B
    else:
        tb = row_tile
    grid = (pl.cdiv(B, tb),)

    row_spec = pl.BlockSpec((tb, H), lambda i: (i, 0))

    out_shapes = (
        jax.ShapeDtypeStruct((B, H), out_dtype),
        jax.ShapeDtypeStruct((B, H), out_dtype),
    )

    return pl.pallas_call(
        _complex_multiply_pool_kernel,
        out_shape=out_shapes,
        grid=grid,
        in_specs=[row_spec, row_spec],
        out_specs=(row_spec, row_spec),
        compiler_params=pltpu.CompilerParams(
            dimension_semantics=("parallel",),
        ),
    )(amp0, ph0)


if __name__ == "__main__":
    B, S, H = 2, 8, 128  # batch, seq, hidden
    key = jax.random.PRNGKey(0)
    k_amp, k_phase = jax.random.split(key)
    amplitude = jax.random.normal(k_amp, (B, S, H), dtype=jnp.float32)
    phase = jax.random.uniform(
        k_phase, (B, S, H), dtype=jnp.float32, minval=-jnp.pi, maxval=jnp.pi
    )

    real, imag = complex_multiply_pool(amplitude, phase)
    jax.block_until_ready((real, imag))

    # Reference check in plain JAX (matches the PyTorch forward).
    ref_real = (amplitude * jnp.cos(phase))[:, 0]
    ref_imag = (amplitude * jnp.sin(phase))[:, 0]
    assert real.shape == (B, H) and imag.shape == (B, H)
    assert jnp.allclose(real, ref_real, atol=1e-5, rtol=1e-5)
    assert jnp.allclose(imag, ref_imag, atol=1e-5, rtol=1e-5)

    # bf16 inputs: compute still happens in f32 inside the kernel.
    amp_bf16 = amplitude.astype(jnp.bfloat16)
    ph_bf16 = phase.astype(jnp.bfloat16)
    real_bf, imag_bf = complex_multiply_pool(amp_bf16, ph_bf16)
    jax.block_until_ready((real_bf, imag_bf))
    ref_real_bf = (amp_bf16.astype(jnp.float32) * jnp.cos(ph_bf16.astype(jnp.float32)))[:, 0]
    ref_imag_bf = (amp_bf16.astype(jnp.float32) * jnp.sin(ph_bf16.astype(jnp.float32)))[:, 0]
    assert jnp.allclose(real_bf.astype(jnp.float32), ref_real_bf, atol=2e-2, rtol=2e-2)
    assert jnp.allclose(imag_bf.astype(jnp.float32), ref_imag_bf, atol=2e-2, rtol=2e-2)

    print("KERNEL_OK")
</pallas_src>

<mosaic_0001>
module attributes {stable_mosaic.version = 11 : i64} {
  func.func @_complex_multiply_pool_kernel(%arg0: i32, %arg1: memref<2x128xf32, #tpu.memory_space<vmem>>, %arg2: memref<2x128xf32, #tpu.memory_space<vmem>>, %arg3: memref<2x128xf32, #tpu.memory_space<vmem>>, %arg4: memref<2x128xf32, #tpu.memory_space<vmem>>) attributes {dimension_semantics = [#tpu.dimension_semantics<parallel>], iteration_bounds = array<i64: 1>, scalar_prefetch = 0 : i64, scratch_operands = 0 : i64, tpu.core_type = #tpu.core_type<tc>, window_params = [{transform_indices = @transform_0, window_bounds = array<i64: 2, 128>}, {transform_indices = @transform_1, window_bounds = array<i64: 2, 128>}, {transform_indices = @transform_2, window_bounds = array<i64: 2, 128>}, {transform_indices = @transform_3, window_bounds = array<i64: 2, 128>}]} {
    %c0 = arith.constant 0 : index
    %c0_0 = arith.constant 0 : index
    %0 = vector.load %arg1[%c0, %c0_0] : memref<2x128xf32, #tpu.memory_space<vmem>>, vector<2x128xf32>
    %c0_1 = arith.constant 0 : index
    %c0_2 = arith.constant 0 : index
    %1 = vector.load %arg2[%c0_1, %c0_2] : memref<2x128xf32, #tpu.memory_space<vmem>>, vector<2x128xf32>
    %2 = math.cos %1 : vector<2x128xf32>
    %3 = math.sin %1 : vector<2x128xf32>
    %4 = arith.mulf %0, %2 : vector<2x128xf32>
    %c0_3 = arith.constant 0 : index
    %c0_4 = arith.constant 0 : index
    %5 = vector.load %arg3[%c0_3, %c0_4] : memref<2x128xf32, #tpu.memory_space<vmem>>, vector<2x128xf32>
    tpu.vector_store %arg3[%c0_3, %c0_4], %4 {strides = array<i32>} : memref<2x128xf32, #tpu.memory_space<vmem>>, vector<2x128xf32>,
    %6 = arith.mulf %0, %3 : vector<2x128xf32>
    %c0_5 = arith.constant 0 : index
    %c0_6 = arith.constant 0 : index
    %7 = vector.load %arg4[%c0_5, %c0_6] : memref<2x128xf32, #tpu.memory_space<vmem>>, vector<2x128xf32>
    tpu.vector_store %arg4[%c0_5, %c0_6], %6 {strides = array<i32>} : memref<2x128xf32, #tpu.memory_space<vmem>>, vector<2x128xf32>,
    return
  }
  func.func @transform_0(%arg0: i32) -> (i32, i32) {
    %c0_i32 = arith.constant 0 : i32
    %c0_i32_0 = arith.constant 0 : i32
    return %arg0, %c0_i32 : i32, i32
  }
  func.func @transform_1(%arg0: i32) -> (i32, i32) {
    %c0_i32 = arith.constant 0 : i32
    %c0_i32_0 = arith.constant 0 : i32
    return %arg0, %c0_i32 : i32, i32
  }
  func.func @transform_2(%arg0: i32) -> (i32, i32) {
    %c0_i32 = arith.constant 0 : i32
    %c0_i32_0 = arith.constant 0 : i32
    return %arg0, %c0_i32 : i32, i32
  }
  func.func @transform_3(%arg0: i32) -> (i32, i32) {
    %c0_i32 = arith.constant 0 : i32
    %c0_i32_0 = arith.constant 0 : i32
    return %arg0, %c0_i32 : i32, i32
  }
}

</mosaic_0001>

<bundles_post_ra>
// kernel: tpu_custom_call.1
= control target key start
LH: loop header
LB: loop body
LE: loop exit
PB: predicated region body
PF: predicated region fallthrough
CT: control target
= control target key end

     0   :  { %9 = vsyncpa [#allocation3], 0  ;;  %s459_s0 = inlined_call_operand.hbm [shape: f32[2,128], index: 0, kind: input, shape index: {}]   ;;  %s460_s1 = inlined_call_operand.hbm [shape: f32[2,128], index: 1, kind: input, shape index: {}]   ;;  %s461_s2 = inlined_call_operand.hbm [shape: f32[2,128], index: 2, kind: output, shape index: {0}]   ;;  %s462_s3 = inlined_call_operand.hbm [shape: f32[2,128], index: 3, kind: output, shape index: {1}]  }
   0x1   :  { %10 = vsyncpa [#allocation6], 0 }
   0x2   :  { %11 = vsyncpa [#allocation4], 0 }
   0x3   :  { %12 = vsyncpa [#allocation9], 0  ;;  %s396_s12 = smov [#allocation2]   ;;  %s397_s14 = smov [#allocation5]  }
   0x4   :  { %s19_s13 = sshll.u32 %s396_s12, 4  ;;  %s29_s15 = sshll.u32 %s397_s14, 4  ;;  %s20_s13 = int_to_ptr.vmem [resolvable:$true] %s19_s13  ;;  %s30_s15 = int_to_ptr.vmem [resolvable:$true] %s29_s15 }
   0x5   :  { %s316_s16 = scalar_lea.vmem %s20_s13, 32  ;;  %p321_p1 = scmp.lt.s32.totalorder %s20_s13, %s20_s13 }
   0x6   :  { %p317_p0 = scmp.ne.s32.totalorder %s20_s13, %s316_s16  ;;  %p322_p2 = scmp.lt.s32.totalorder %s316_s16, %s316_s16 }
   0x8   :  { %p323_p3 = por %p322_p2, %p321_p1 }
   0xa   :  { %p324_p4 = pnand %p323_p3, %p317_p0 }
   0xc   :  { %327 = shalt.err (!%p324_p4)
}
   0xd   :  { %22 = dma.hbm_to_vmem [thread:$0]  %s459_s0, 32, %s20_s13, [#allocation3]  }
   0xe   :  { %s336_s19 = scalar_lea.vmem %s30_s15, 32  ;;  %p341_p6 = scmp.lt.s32.totalorder %s30_s15, %s30_s15 }
   0xf   :  { %p337_p5 = scmp.ne.s32.totalorder %s30_s15, %s336_s19  ;;  %p342_p7 = scmp.lt.s32.totalorder %s336_s19, %s336_s19 }
  0x11   :  { %p343_p8 = por %p342_p7, %p341_p6 }
  0x13   :  { %p344_p9 = pnand %p343_p8, %p337_p5 }
  0x15   :  { %347 = shalt.err (!%p344_p9)
}
  0x16   :  { %32 = dma.hbm_to_vmem [thread:$0]  %s460_s1, 32, %s30_s15, [#allocation6]  }
  0x17   :  { %388 = dma.done.wait [#allocation3], 32  }
  0x18   :  { %389 = vsyncadd [#allocation3], 4294967264 }
  0x19   :  { %390 = dma.done.wait [#allocation6], 32  }
  0x1a   :  { %391 = vsyncadd [#allocation6], 4294967264  ;;  %v432_v0 = vld [vmem:[#allocation5] sm:$0x3]  ;;  %v398_v12 = vmov 683565275  }
  0x1b   :  { %v44_v1 = vand.u32 2139095040, %v432_v0  ;;  %v41_v3 = vand.u32 2147483647, %v432_v0  ;;  %v399_v14 = vmov 2475754826   ;;  %vm43_vm7 = vcmp.lt.s32.totalorder %v432_v0, 0 }
  0x1c   :  { %v400_v16 = vmov 2131351028   ;;  %v401_v18 = vmov 2102212464   ;;  %v402_v20 = vmov 920167782   ;;  %vm133_vm15 = vweird.f32 %v432_v0 }
  0x1d   :  { %v45_v2 = vshrl.u32 %v44_v1, 23  ;;  %v48_v6 = vand.u32 8388607, %v41_v3  ;;  %v403_v27 = vmov 1326507024   ;;  %s404_s0 = smov [#allocation7]  }
  0x1e   :  { %vm42_vm8 = vcmp.le.f32.partialorder %v41_v3, 0.7853982  ;;  %s258_s1 = sshll.u32 %s404_s0, 4  ;;  %s405_s22 = smov [#allocation8]   ;;  %s259_s1 = int_to_ptr.vmem [resolvable:$true] %s258_s1 }
  0x1f   :  { %v282_v4 = vadd.s32 4294967169, %v45_v2  ;;  %v49_v9 = vor.u32 8388608, %v48_v6  ;;  %s268_s23 = sshll.u32 %s405_s22, 4  ;;  %s348_s24 = scalar_lea.vmem %s259_s1, 32  ;;  %s269_s23 = int_to_ptr.vmem [resolvable:$true] %s268_s23 }
  0x20   :  { %p349_p10 = scmp.ne.s32.totalorder %s259_s1, %s348_s24  ;;  %p353_p11 = scmp.lt.s32.totalorder %s259_s1, %s259_s1 }
  0x21   :  { %v51_v5 = vadd.s32 1, %v282_v4  ;;  %v89_v29 = vshll.u32 %v49_v9, 8  ;;  %p354_p12 = scmp.lt.s32.totalorder %s348_s24, %s348_s24 }
  0x23   :  { %vm52_vm0 = vcmp.gt.s32.totalorder %v51_v5, 0  ;;  %p355_p13 = por %p354_p12, %p353_p11 }
  0x24   :  { %v53_v7 = vsel %vm52_vm0, %v51_v5, 0 }
  0x25   :  { %v55_v8 = vand.u32 31, %v53_v7  ;;  %v54_v10 = vshrl.u32 %v53_v7, 5  ;;  %p356_p0 = pnand %p355_p13, %p349_p10 }
  0x27   :  { %v56_v11 = vsub.s32 32, %v55_v8  ;;  %v58_v13 = vshll.u32 %v398_v12, %v55_v8  ;;  %v61_v15 = vshll.u32 %v399_v14, %v55_v8  ;;  %v64_v17 = vshll.u32 %v400_v16, %v55_v8 }
  0x28   :  { %v67_v19 = vshll.u32 %v401_v18, %v55_v8  ;;  %v70_v21 = vshll.u32 %v402_v20, %v55_v8  ;;  %vm73_vm1 = vcmp.lt.s32.totalorder %v54_v10, 1  ;;  %vm76_vm2 = vcmp.lt.s32.totalorder %v54_v10, 4 }
  0x29   :  { %v57_v22 = vshrl.u32 %v398_v12, %v56_v11  ;;  %v59_v23 = vshrl.u32 %v399_v14, %v56_v11  ;;  %v62_v24 = vshrl.u32 %v400_v16, %v56_v11  ;;  %v65_v25 = vshrl.u32 %v401_v18, %v56_v11 }
  0x2a   :  { %v68_v26 = vshrl.u32 %v402_v20, %v56_v11  ;;  %v71_v28 = vshrl.u32 %v403_v27, %v56_v11  ;;  %vm74_vm3 = vcmp.lt.s32.totalorder %v54_v10, 2  ;;  %vm75_vm4 = vcmp.lt.s32.totalorder %v54_v10, 3 }
  0x2b   :  { %v60_v30 = vor.u32 %v59_v23, %v58_v13  ;;  %v63_v31 = vor.u32 %v62_v24, %v61_v15  ;;  %v66_v32 = vor.u32 %v65_v25, %v64_v17 }
  0x2c   :  { %v69_v33 = vor.u32 %v68_v26, %v67_v19  ;;  %v72_v34 = vor.u32 %v71_v28, %v70_v21  ;;  %v39_v28 = vld [vmem:[#allocation2] sm:$0x3] }
  0x2d   :  { %v77_v35 = vsel %vm73_vm1, %v57_v22, %v60_v30  ;;  %v78_v36 = vsel %vm76_vm2, %v66_v32, 2102212464  ;;  %v81_v37 = vsel %vm73_vm1, %v60_v30, %v63_v31  ;;  %v85_v38 = vsel %vm73_vm1, %v63_v31, %v66_v32 }
  0x2e   :  { %v79_v39 = vsel %vm75_vm4, %v63_v31, %v78_v36  ;;  %v82_v40 = vsel %vm76_vm2, %v69_v33, 920167782  ;;  %v86_v41 = vsel %vm76_vm2, %v72_v34, 1326507024 }
  0x2f   :  { %v83_v42 = vsel %vm75_vm4, %v66_v32, %v82_v40  ;;  %v87_v43 = vsel %vm75_vm4, %v69_v33, %v86_v41  ;;  %v80_v44 = vsel %vm74_vm3, %v77_v35, %v79_v39 }
  0x30   :  { %v84_v45 = vsel %vm74_vm3, %v81_v37, %v83_v42  ;;  %v88_v46 = vsel %vm74_vm3, %v85_v38, %v87_v43  ;;  %v96_v51 = vmul.u32 %v89_v29, %v80_v44 }
  0x31   :  { %v438_v47 = vmul.u32.u64.low %v89_v29, %v88_v46  ;;  %v439_v48 = vmul.u32.u64.high %v89_v29, %v88_v46, %v438_v47  ;;  %v441_v49 = vmul.u32.u64.low %v89_v29, %v84_v45  ;;  %v442_v50 = vmul.u32.u64.high %v89_v29, %v84_v45, %v441_v49 }
  0x33   :  { %vm98_vm5 = vc.u32 %v439_v48, %v441_v49  ;;  %v99_v52 = vadd.s32 1, %v442_v50  ;;  %v97_v63 = vadd.s32 %v441_v49, %v439_v48 }
  0x35   :  { %v100_v53 = vsel %vm98_vm5, %v99_v52, %v442_v50 }
  0x36   :  { %v101_v54 = vadd.s32 %v100_v53, %v96_v51 }
  0x38   :  { %v102_v55 = vadd.s32 536870912, %v101_v54 }
  0x3a   :  { %v103_v56 = vshrl.u32 %v102_v55, 30 }
  0x3c   :  { %v104_v57 = vshll.u32 %v103_v56, 30  ;;  %v127_v14 = vsub.s32 4, %v103_v56 }
  0x3e   :  { %v105_v58 = vsub.s32 %v101_v54, %v104_v57  ;;  %v128_v17 = vsel %vm43_vm7, %v127_v14, %v103_v56 }
  0x3f   :  { %v130_v19 = vsel %vm42_vm8, 0, %v128_v17 }
  0x40   :  { %v107_v59 = vsub.s32 0, %v105_v58  ;;  %v237_v20 = vadd.s32 3, %v130_v19  ;;  %v134_v21 = vand.u32 3, %v130_v19 }
  0x42   :  { %v283_v60 = vmin.u32 %v107_v59, %v105_v58  ;;  %v238_v22 = vand.u32 3, %v237_v20  ;;  %vm139_vm9 = vcmp.eq.s32.totalorder %v134_v21, 2  ;;  %vm136_vm11 = vcmp.eq.s32.totalorder %v134_v21, 0 }
  0x43   :  { %vm135_vm13 = vcmp.lt.s32.totalorder %v134_v21, 2 }
  0x44   :  { %v109_v61 = vclz %v283_v60  ;;  %vm243_vm10 = vcmp.eq.s32.totalorder %v238_v22, 2  ;;  %vm240_vm12 = vcmp.eq.s32.totalorder %v238_v22, 0  ;;  %vm239_vm14 = vcmp.lt.s32.totalorder %v238_v22, 2 }
  0x46   :  { %v284_v62 = vadd.s32 4294967294, %v109_v61 }
  0x48   :  { %vm285_vm6 = vcmp.lt.s32.totalorder %v284_v62, 0 }
  0x49   :  { %v112_v1 = vsel %vm285_vm6, 0, %v284_v62 }
  0x4a   :  { %v113_v2 = vsub.s32 32, %v112_v1  ;;  %v114_v4 = vshll.u32 %v105_v58, %v112_v1  ;;  %v117_v5 = vsub.s32 4294967266, %v112_v1 }
  0x4c   :  { %v115_v6 = vshrl.u32 %v97_v63, %v113_v2  ;;  %v118_v7 = vadd.s32 127, %v117_v5 }
  0x4e   :  { %v116_v8 = vor.u32 %v115_v6, %v114_v4  ;;  %v119_v9 = vshll.u32 %v118_v7, 23 }
  0x50   :  { %v120_v10 = vor.u32 4788187, %v119_v9  ;;  %v123_v11 = vcvt.s32.f32 %v116_v8 }
  0x52   :  { %v121_v12 = vand.u32 2147483647, %v120_v10 }
  0x54   :  { %v124_v13 = vmul.f32 %v123_v11, %v121_v12 }
  0x56   :  { %v125_v15 = vxor.u32 2147483648, %v124_v13 }
  0x58   :  { %v126_v16 = vsel %vm43_vm7, %v125_v15, %v124_v13 }
  0x59   :  { %v129_v18 = vsel %vm42_vm8, %v432_v0, %v126_v16 }
  0x5a   :  { %304 = vcosq.f32 %v129_v18 }
  0x5b   :  { %306 = vsinq.f32 %v129_v18 }
  0x67   :  { %v305_v23 = vpop.eup %304 }
  0x68   :  { %v307_v24 = vpop.eup %306  ;;  %v140_v25 = vxor.u32 2147483648, %v305_v23 }
  0x69   :  { %v137_v3 = vxor.u32 2147483648, %v307_v24 }
  0x6a   :  { %v141_v26 = vsel %vm139_vm9, %v140_v25, %v307_v24  ;;  %v245_v27 = vsel %vm243_vm10, %v140_v25, %v307_v24 }
  0x6b   :  { %v138_v29 = vsel %vm136_vm11, %v305_v23, %v137_v3  ;;  %v242_v30 = vsel %vm240_vm12, %v305_v23, %v137_v3 }
  0x6c   :  { %v142_v31 = vsel %vm135_vm13, %v138_v29, %v141_v26  ;;  %v246_v32 = vsel %vm239_vm14, %v242_v30, %v245_v27 }
  0x6d   :  { %v143_v33 = vsel %vm133_vm15, nan, %v142_v31  ;;  %v247_v34 = vsel %vm133_vm15, nan, %v246_v32 }
  0x6e   :  { %v248_v35 = vmul.f32 %v143_v33, %v39_v28  ;;  %v250_v36 = vmul.f32 %v247_v34, %v39_v28 }
  0x70   :  { %249 = vst [vmem:[#allocation7] sm:$0x3] %v248_v35  ;;  %251 = vst [vmem:[#allocation8] sm:$0x3] %v250_v36 }
  0x71   :  { %359 = shalt.err (!%p356_p0)
}
  0x72   :  { %261 = dma.vmem_to_hbm [thread:$0]  %s259_s1, 32, %s461_s2, [#allocation4]  }
  0x73   :  { %s368_s27 = scalar_lea.vmem %s269_s23, 32  ;;  %p373_p2 = scmp.lt.s32.totalorder %s269_s23, %s269_s23 }
  0x74   :  { %p369_p1 = scmp.ne.s32.totalorder %s269_s23, %s368_s27  ;;  %p374_p3 = scmp.lt.s32.totalorder %s368_s27, %s368_s27 }
  0x76   :  { %p375_p4 = por %p374_p3, %p373_p2 }
  0x78   :  { %p376_p5 = pnand %p375_p4, %p369_p1 }
  0x7a   :  { %379 = shalt.err (!%p376_p5)
}
  0x7b   :  { %271 = dma.vmem_to_hbm [thread:$0]  %s269_s23, 32, %s462_s3, [#allocation9]  }
  0x7c   :  { %392 = dma.done.wait [#allocation4], 32  }
  0x7d   :  { %393 = vsyncadd [#allocation4], 4294967264 }
  0x7e   :  { %394 = dma.done.wait [#allocation9], 32  }
  0x7f   :  { %395 = vsyncadd [#allocation9], 4294967264 }
  0x80   :  { %278 = vsyncpa [#allocation3], 1 }
  0x81   :  { %279 = vsyncpa [#allocation6], 1 }
  0x82   :  { %280 = vsyncpa [#allocation4], 1 }
  0x83   :  { %281 = vsyncpa [#allocation9], 1 }

</bundles_post_ra>
